<compile_context>
chip_gen: v6e
topology: v6e:2x2x1
jax: 0.10.0
libtpu: 0.0.40
codegen_flags: <defaults>
</compile_context>

<pallas_src>
import jax
import jax.numpy as jnp
from jax.experimental import pallas as pl
from jax.experimental.pallas import tpu as pltpu


def _round_up(n, m):
    return ((n + m - 1) // m) * m


def qnetwork_kernel(x_ref, wc_ref, bc_ref, o_ref):
    # One fused affine map: x @ Wc + bc  (fp32 accumulation on the MXU).
    acc = jnp.dot(x_ref[...], wc_ref[...], preferred_element_type=jnp.float32)
    o_ref[...] = (acc + bc_ref[...]).astype(o_ref.dtype)


def compose_params(params):
    """Fold the activation-free Linear chain into one (K, N) weight + (1, N) bias.

    Do this ONCE per parameter set (it is four tiny matmuls in plain XLA).
    """
    (w1, b1) = params[0]
    wc, bc = w1, b1
    for w, b in params[1:]:
        wc = wc @ w
        bc = bc @ w + b
    return wc, bc


def qnetwork_forward(x, wc, bc, *, block_batch=2048, use_bf16=False):
    """x: (batch, K) fp32; wc: (K, N); bc: (1, N).  Returns (batch, N) fp32."""
    batch, k = x.shape
    kw, n = wc.shape
    assert k == kw, f"feature mismatch: x has {k}, composed weight has {kw}"

    # Batch tiling: small batches run as a single tile; large batches get a
    # pipelined batch grid (and megacore sharding where available).
    tb = min(block_batch, _round_up(batch, 8))
    bp = _round_up(batch, tb)
    if bp != batch:
        x = jnp.pad(x, ((0, bp - batch), (0, 0)))

    if use_bf16:
        # Halves HBM traffic for the dominant x stream; MXU still accumulates fp32.
        x = x.astype(jnp.bfloat16)
        wc = wc.astype(jnp.bfloat16)

    grid = (bp // tb,)
    in_bytes = (x.size * x.dtype.itemsize
                + wc.size * wc.dtype.itemsize
                + bc.size * bc.dtype.itemsize)
    out_bytes = bp * n * 4
    cost = pl.CostEstimate(flops=2 * bp * k * n,
                           transcendentals=0,
                           bytes_accessed=in_bytes + out_bytes)

    out = pl.pallas_call(
        qnetwork_kernel,
        out_shape=jax.ShapeDtypeStruct((bp, n), jnp.float32),
        grid=grid,
        in_specs=[
            pl.BlockSpec((tb, k), lambda i: (i, 0)),   # batch-tiled activations
            pl.BlockSpec((k, n), lambda i: (0, 0)),    # VMEM-resident composed weight
            pl.BlockSpec((1, n), lambda i: (0, 0)),    # VMEM-resident composed bias
        ],
        out_specs=pl.BlockSpec((tb, n), lambda i: (i, 0)),
        compiler_params=pltpu.CompilerParams(
            dimension_semantics=("parallel",)),
        cost_estimate=cost,
    )(x, wc, bc)
    return out[:batch]


def init_linear(key, fan_in, fan_out):
    # Mimics PyTorch Linear default init: U(-1/sqrt(fan_in), 1/sqrt(fan_in)).
    k_w, k_b = jax.random.split(key)
    bound = 1.0 / jnp.sqrt(jnp.float32(fan_in))
    # Stored as (in, out) so forward computes x @ W + b (== x @ W_pt.T + b).
    w = jax.random.uniform(k_w, (fan_in, fan_out), jnp.float32, -bound, bound)
    b = jax.random.uniform(k_b, (1, fan_out), jnp.float32, -bound, bound)
    return w, b


def make_params(input_size, output_size, hidden_node=(64, 32, 8), seed=0):
    key = jax.random.PRNGKey(seed)
    sizes = [input_size] + list(hidden_node) + [output_size]
    params = []
    for i in range(len(sizes) - 1):
        key, sub = jax.random.split(key)
        params.append(init_linear(sub, sizes[i], sizes[i + 1]))
    return params


def reference_forward(x, params):
    # Layer-by-layer reference, exactly mirroring the PyTorch forward (no activations).
    h = x
    for w, b in params:
        h = h @ w + b
    return h


if __name__ == "__main__":
    input_size = 37   # e.g. Banana-env state size
    output_size = 4   # action size
    batch = 8

    params = make_params(input_size, output_size, hidden_node=(64, 32, 8), seed=0)
    wc, bc = compose_params(params)   # one-time fold of the affine chain

    key = jax.random.PRNGKey(0)
    x = jax.random.normal(key, (batch, input_size), jnp.float32)

    # Small-batch path (single tile, single grid step).
    out = jax.block_until_ready(qnetwork_forward(x, wc, bc))
    ref = reference_forward(x, params)
    assert out.shape == (batch, output_size)
    assert jnp.allclose(out, ref, atol=1e-4, rtol=1e-4)

    # Uneven batch with a small batch tile: exercises the pipelined / parallel
    # batch grid plus batch padding + unpadding.
    xl = jax.random.normal(jax.random.PRNGKey(1), (200, input_size), jnp.float32)
    out_l = jax.block_until_ready(qnetwork_forward(xl, wc, bc, block_batch=64))
    ref_l = reference_forward(xl, params)
    assert out_l.shape == (200, output_size)
    assert jnp.allclose(out_l, ref_l, atol=1e-4, rtol=1e-4)

    # Optional bf16 input/weight path (fp32 MXU accumulation) for bandwidth-bound
    # large batches; loose tolerance since inputs/weights are rounded to bf16.
    out_bf = jax.block_until_ready(qnetwork_forward(xl, wc, bc, use_bf16=True))
    assert out_bf.shape == (200, output_size)
    assert jnp.allclose(out_bf, ref_l, atol=1e-1, rtol=1e-1)

    print("KERNEL_OK")
</pallas_src>

<mosaic_0001>
module attributes {stable_mosaic.version = 11 : i64} {
  func.func @qnetwork_kernel(%arg0: i32, %arg1: memref<8x37xf32, #tpu.memory_space<vmem>>, %arg2: memref<37x4xf32, #tpu.memory_space<vmem>>, %arg3: memref<1x4xf32, #tpu.memory_space<vmem>>, %arg4: memref<8x4xf32, #tpu.memory_space<vmem>>) attributes {dimension_semantics = [#tpu.dimension_semantics<parallel>], iteration_bounds = array<i64: 1>, scalar_prefetch = 0 : i64, scratch_operands = 0 : i64, tpu.core_type = #tpu.core_type<tc>, window_params = [{transform_indices = @transform_0, window_bounds = array<i64: 8, 37>}, {pipeline_mode = #tpu.pipeline_mode<synchronous>, transform_indices = @transform_1, window_bounds = array<i64: 37, 4>}, {pipeline_mode = #tpu.pipeline_mode<synchronous>, transform_indices = @transform_2, window_bounds = array<i64: 1, 4>}, {transform_indices = @transform_3, window_bounds = array<i64: 8, 4>}]} {
    %c0 = arith.constant 0 : index
    %c0_0 = arith.constant 0 : index
    %0 = vector.load %arg1[%c0, %c0_0] : memref<8x37xf32, #tpu.memory_space<vmem>>, vector<8x37xf32>
    %c0_1 = arith.constant 0 : index
    %c0_2 = arith.constant 0 : index
    %1 = vector.load %arg2[%c0_1, %c0_2] : memref<37x4xf32, #tpu.memory_space<vmem>>, vector<37x4xf32>
    %cst = arith.constant dense<0.000000e+00> : vector<8x4xf32>
    %2 = tpu.matmul %0, %1, %cst {dimension_numbers = #tpu.dot_dimension_numbers<[1], [0], [0], [1], [0, 0, 1, 1], [], []>} : vector<8x37xf32>, vector<37x4xf32>, vector<8x4xf32> -> vector<8x4xf32>
    %c0_3 = arith.constant 0 : index
    %c0_4 = arith.constant 0 : index
    %3 = vector.load %arg3[%c0_3, %c0_4] : memref<1x4xf32, #tpu.memory_space<vmem>>, vector<1x4xf32>
    %4 = vector.broadcast %3 : vector<1x4xf32> to vector<8x4xf32>
    %5 = arith.addf %2, %4 : vector<8x4xf32>
    %c0_5 = arith.constant 0 : index
    %c0_6 = arith.constant 0 : index
    %6 = vector.load %arg4[%c0_5, %c0_6] : memref<8x4xf32, #tpu.memory_space<vmem>>, vector<8x4xf32>
    tpu.vector_store %arg4[%c0_5, %c0_6], %5 {strides = array<i32>} : memref<8x4xf32, #tpu.memory_space<vmem>>, vector<8x4xf32>,
    return
  }
  func.func @transform_0(%arg0: i32) -> (i32, i32) {
    %c0_i32 = arith.constant 0 : i32
    %c0_i32_0 = arith.constant 0 : i32
    return %arg0, %c0_i32 : i32, i32
  }
  func.func @transform_1(%arg0: i32) -> (i32, i32) {
    %c0_i32 = arith.constant 0 : i32
    %c0_i32_0 = arith.constant 0 : i32
    %c0_i32_1 = arith.constant 0 : i32
    return %c0_i32, %c0_i32_0 : i32, i32
  }
  func.func @transform_2(%arg0: i32) -> (i32, i32) {
    %c0_i32 = arith.constant 0 : i32
    %c0_i32_0 = arith.constant 0 : i32
    %c0_i32_1 = arith.constant 0 : i32
    return %c0_i32, %c0_i32_0 : i32, i32
  }
  func.func @transform_3(%arg0: i32) -> (i32, i32) {
    %c0_i32 = arith.constant 0 : i32
    %c0_i32_0 = arith.constant 0 : i32
    return %arg0, %c0_i32 : i32, i32
  }
}

</mosaic_0001>

<bundles_post_ra>
// kernel: tpu_custom_call.1
= control target key start
LH: loop header
LB: loop body
LE: loop exit
PB: predicated region body
PF: predicated region fallthrough
CT: control target
= control target key end

     0   :  { %vm31_vm0 = vcmask 1044480   ;;  %v135_v0 = vmov 0.0   ;;  %vm136_vm1 = vmmov 0   ;;  %vm27_vm2 = vcmask 302080   ;;  %s181_s1 = inlined_call_operand.vmem [shape: f32[37,4], index: 1, kind: input, shape index: {}]   ;;  %s182_s0 = inlined_call_operand.vmem [shape: f32[8,37], index: 0, kind: input, shape index: {}]   ;;  %s183_s2 = inlined_call_operand.vmem [shape: f32[1,4], index: 2, kind: input, shape index: {}]   ;;  %s184_s3 = inlined_call_operand.vmem [shape: f32[8,4], index: 3, kind: output, shape index: {}]  }
   0x1   :  { %120 = vmatprep.subr.mxu0 %v135_v0  ;;  %v19_v1 = vld [vmem:[%s181_s1 + $0x20] sm:$0x1f]  ;;  %v18_v2 = vld [vmem:[%s181_s1 + $0x18] sm:$0xff]  ;;  %130 = vmatprep.mubr.msk.f32.mxu0 %vm136_vm1, %v135_v0  ;;  %v17_v3 = vld [vmem:[%s181_s1 + $0x10] sm:$0xff]  ;;  %vm105_vm3 = vcmask 31744  }
   0x2   :  { %121 = vmatpush3.msk.msra.mxu0 %vm31_vm0, %v19_v1  ;;  %v16_v4 = vld [vmem:[%s181_s1 + $0x8] sm:$0xff]  ;;  %v15_v5 = vld [vmem:[%s181_s1] sm:$0xff] }
   0x3   :  { %122 = vmatprep.subr.mxu0 %v135_v0  ;;  %v14_v6 = vld [vmem:[%s182_s0] sm:$0xff] }
   0x4   :  { %123 = vmatpush3.msra.mxu0 %v18_v2  ;;  %v111_v7 = vld [vmem:[%s183_s2] ss:$0 sm:$0xff] }
   0x5   :  { %124 = vmatprep.subr.mxu0 %v135_v0 }
   0x6   :  { %125 = vmatpush3.msra.mxu0 %v17_v3 }
   0x7   :  { %126 = vmatprep.subr.mxu0 %v135_v0 }
   0x8   :  { %127 = vmatpush3.msra.mxu0 %v16_v4 }
   0x9   :  { %128 = vmatprep.subr.mxu0 %v135_v0 }
   0xa   :  { %129 = vmatpush3.msra.mxu0 %v15_v5 }
   0xb   :  { %131 = vmatmul.mubr.msk.f32.vlgmr.msra.gmra.mxu0 %vm27_vm2, %v14_v6 }
  0xcb   :  { %v101_v8 = vpop.f32.mrf.mxu0 }
  0xcc   :  { %v102_v9 = vadd.f32 %v111_v7, %v101_v8 }
  0xcd   :  { %v132_v10 = vpop.f32.mrf.mxu0 }
  0xce   :  { %106 = vst.msk [vmem:[%s184_s3] sm:$0xff] %vm105_vm3, %v102_v9 }

</bundles_post_ra>
